<compile_context>
chip_gen: v7x
topology: tpu7x:2x2x1
jax: 0.10.0
libtpu: 0.0.40
codegen_flags: <defaults>
</compile_context>

<pallas_src>
import jax
import jax.numpy as jnp
from jax.experimental import pallas as pl
from jax.experimental.pallas import tpu as pltpu

# ----------------------- hyper-parameters (small) ---------------------------
VOCAB        = 50
EMBED        = 32
HIDDEN       = 16
NUM_CLASSES  = 4
NUM_FILTERS  = 8
FILTER_SIZES = (3, 4, 5)
NUM_LAYERS   = 2          # bi-directional, 2 layers
B            = 8          # fills all 8 sublanes per vreg / MXU row block
SEQ          = 16
B_TILE       = 8          # batch rows per grid step

LANES   = 128
NCONV   = len(FILTER_SIZES) * NUM_FILTERS      # 24 = LSTM layer-0 input dim
GATE2   = 2 * HIDDEN                           # 32 = fused fwd|bwd gate block

# Packed-parameter row layout (single (128,128) f32 buffer).
R_CONV_W    = 0                                # rows [0, 32): conv taps (E, 96 used)
R_LSTM0_W   = R_CONV_W + EMBED                 # rows [32, 56): layer-0 W_ih^T fused
R_LSTM1_W   = R_LSTM0_W + NCONV                # rows [56, 88): layer-1 W_ih^T fused
R_FC_W      = R_LSTM1_W + 2 * HIDDEN           # rows [88, 120): fc W^T (cols >=4 zero)
R_BIAS      = R_FC_W + 2 * HIDDEN              # rows [120, 124): biases
PARAM_ROWS  = 128

assert 8 * HIDDEN == LANES                     # fused LSTM gates fill 128 lanes
assert sum(FILTER_SIZES) * NUM_FILTERS <= LANES
assert R_BIAS + 4 <= PARAM_ROWS


# ------------------------------ Pallas kernel -------------------------------
def cnn_bilstm_kernel(emb_ref, p_ref, out_ref):
    emb = emb_ref[...]                                   # (BT, S, E) f32
    BT, S, E = emb.shape
    F = NUM_FILTERS

    # ---- CNN: one lane-dense MXU push over packed per-(k,dk) filter columns
    y = jnp.dot(emb.reshape(BT * S, E),
                p_ref[R_CONV_W:R_CONV_W + EMBED, :],
                preferred_element_type=jnp.float32)      # (BT*S, 128)
    y = y.reshape(BT, S, LANES)

    # Shifted VPU adds per filter size, then max-pool over time.
    def conv_maxpool(k, col0):
        T = S - k + 1
        acc = y[:, 0:T, col0:col0 + F]                   # dk = 0 initializes acc
        for dk in range(1, k):                           # static unroll (k<=5)
            acc = acc + y[:, dk:dk + T,
                          col0 + dk * F:col0 + (dk + 1) * F]
        return jnp.max(acc, axis=1)                      # (BT, F)

    pooled = jnp.concatenate(
        [conv_maxpool(3, 0),
         conv_maxpool(4, 3 * F),
         conv_maxpool(5, 7 * F)], axis=1)                # (BT, 3F)

    biases = p_ref[R_BIAS:R_BIAS + 8, :]                 # single bias-block load
    # relu(max_t(acc) + b) == max_t(relu(acc + b)): bias/ReLU commute with max.
    x = jnp.maximum(pooled + biases[0:1, 0:3 * F], 0.0)  # cnn_output (BT, 24)

    # ---- fused bidirectional LSTM (length-1 sequence, zero initial state) ----
    def fused_bilstm_cell(xin, w_row0, w_rows, bias_row):
        w = p_ref[w_row0:w_row0 + w_rows, :]             # (din, 8H) fused fwd|bwd
        g = jnp.dot(xin, w, preferred_element_type=jnp.float32) \
            + biases[bias_row:bias_row + 1, :]           # (BT, 128)
        i = jax.nn.sigmoid(g[:, 0:GATE2])                # [i_f | i_b]
        c = i * jnp.tanh(g[:, 2 * GATE2:3 * GATE2])      # c = f*c0 + i*g, c0 == 0
        o = jax.nn.sigmoid(g[:, 3 * GATE2:4 * GATE2])
        return o * jnp.tanh(c)                           # (BT, 2H) = [h_f | h_b]

    x1  = fused_bilstm_cell(x,  R_LSTM0_W, NCONV,      1)   # layer-0 output
    # TODO(synk): inter-layer LSTM dropout and self.dropout are identity (eval mode).
    hid = fused_bilstm_cell(x1, R_LSTM1_W, 2 * HIDDEN, 2)   # cat(hidden[-2], hidden[-1])

    # ---- classifier, lane-dense 128-wide store; wrapper slices [:, :C] ----
    out_ref[...] = (jnp.dot(hid, p_ref[R_FC_W:R_FC_W + 2 * HIDDEN, :],
                            preferred_element_type=jnp.float32)
                    + biases[3:4, :])


# ------------------------------ wrapper --------------------------------------
def run_model(embedded, packed_params, batch_tile=B_TILE):
    """embedded: (B, S, E) f32; packed_params: (128, 128) f32."""
    Bn, S, E = embedded.shape
    Bp = ((Bn + batch_tile - 1) // batch_tile) * batch_tile
    if Bp != Bn:
        embedded = jnp.pad(embedded, ((0, Bp - Bn), (0, 0), (0, 0)))

    out = pl.pallas_call(
        cnn_bilstm_kernel,
        out_shape=jax.ShapeDtypeStruct((Bp, LANES), jnp.float32),
        grid=(Bp // batch_tile,),
        in_specs=[
            pl.BlockSpec((batch_tile, S, E), lambda i: (i, 0, 0)),
            pl.BlockSpec((PARAM_ROWS, LANES), lambda i: (0, 0)),   # resident weights
        ],
        out_specs=pl.BlockSpec((batch_tile, LANES), lambda i: (i, 0)),
        compiler_params=pltpu.CompilerParams(
            dimension_semantics=("parallel",)),          # shards batch tiles on v7x
    )(embedded, packed_params)
    return out[:Bn, :NUM_CLASSES]


# ------------------------- deterministic parameters --------------------------
def init_params(key):
    """Natural (PyTorch-shaped) parameters; W_hh omitted (cannot affect fwd)."""
    def u(k, shape, scale=0.1):
        return jax.random.uniform(k, shape, jnp.float32, -scale, scale)

    keys = iter(jax.random.split(key, 40))
    emb_table = u(next(keys), (VOCAB, EMBED))

    conv = []
    for k in FILTER_SIZES:                               # torch (F,1,k,E) -> (F,k,E)
        conv.append((u(next(keys), (NUM_FILTERS, k, EMBED)),
                     u(next(keys), (NUM_FILTERS,))))

    lstm, din = [], NCONV
    for _ in range(NUM_LAYERS):
        layer = {}
        for d in ("fwd", "bwd"):
            layer[d] = (u(next(keys), (4 * HIDDEN, din)),   # W_ih
                        u(next(keys), (4 * HIDDEN,)),       # b_ih
                        u(next(keys), (4 * HIDDEN,)))       # b_hh
        lstm.append(layer)
        din = 2 * HIDDEN

    fc = (u(next(keys), (NUM_CLASSES, 2 * HIDDEN)),         # torch (C, 2H)
          u(next(keys), (NUM_CLASSES,)))
    return emb_table, {"conv": conv, "lstm": lstm, "fc": fc}


def pack_params(nat):
    """Pack every tensor into one (128,128) f32 buffer (single DMA)."""
    # Dropping W_hh / forget gate is valid ONLY because the module feeds the
    # LSTM a length-1 sequence (cnn_output.unsqueeze(1)) with zero initial state.
    lstm_seq_len = 1
    assert lstm_seq_len == 1, "packed kernel assumes seq_len==1, h0=c0=0"

    P = jnp.zeros((PARAM_ROWS, LANES), jnp.float32)

    # Conv taps: columns grouped [k3: dk0..2 | k4: dk0..3 | k5: dk0..4], F each.
    col = 0
    for w, _ in nat["conv"]:                              # w: (F, k, E)
        for dk in range(w.shape[1]):
            P = P.at[R_CONV_W:R_CONV_W + EMBED,
                     col:col + NUM_FILTERS].set(w[:, dk, :].T)
            col += NUM_FILTERS
    P = P.at[R_BIAS, 0:NCONV].set(jnp.concatenate([b for _, b in nat["conv"]]))

    def fuse_w(wf, wb):                                   # (4H,din) x2 -> (din,8H)
        cols = []
        for gi in range(4):                               # torch gate order i,f,g,o
            cols.append(wf[gi * HIDDEN:(gi + 1) * HIDDEN, :].T)
            cols.append(wb[gi * HIDDEN:(gi + 1) * HIDDEN, :].T)
        return jnp.concatenate(cols, axis=1)

    def fuse_b(bf, bb):                                   # (4H,) x2 -> (8H,)
        segs = []
        for gi in range(4):
            segs.append(bf[gi * HIDDEN:(gi + 1) * HIDDEN])
            segs.append(bb[gi * HIDDEN:(gi + 1) * HIDDEN])
        return jnp.concatenate(segs)

    l0, l1 = nat["lstm"]
    w0 = fuse_w(l0["fwd"][0], l0["bwd"][0])               # (24, 128)
    b0 = fuse_b(l0["fwd"][1] + l0["fwd"][2], l0["bwd"][1] + l0["bwd"][2])
    w1 = fuse_w(l1["fwd"][0], l1["bwd"][0])               # (32, 128)
    b1 = fuse_b(l1["fwd"][1] + l1["fwd"][2], l1["bwd"][1] + l1["bwd"][2])

    P = P.at[R_LSTM0_W:R_LSTM0_W + NCONV, :].set(w0)
    P = P.at[R_BIAS + 1, :].set(b0)
    P = P.at[R_LSTM1_W:R_LSTM1_W + 2 * HIDDEN, :].set(w1)
    P = P.at[R_BIAS + 2, :].set(b1)

    wfc, bfc = nat["fc"]
    P = P.at[R_FC_W:R_FC_W + 2 * HIDDEN, 0:NUM_CLASSES].set(wfc.T)
    P = P.at[R_BIAS + 3, 0:NUM_CLASSES].set(bfc)
    return P


# --------------------------- pure-JAX reference ------------------------------
def reference_forward(embedded, nat):
    Bn = embedded.shape[0]
    pooled = []
    for (w, b), k in zip(nat["conv"], FILTER_SIZES):
        T = SEQ - k + 1
        acc = jnp.zeros((Bn, T, NUM_FILTERS), jnp.float32)
        for dk in range(k):
            acc = acc + jnp.einsum('bte,fe->btf',
                                   embedded[:, dk:dk + T, :], w[:, dk, :])
        pooled.append(jnp.max(jnp.maximum(acc + b[None, None, :], 0.0), axis=1))
    x = jnp.concatenate(pooled, axis=1)                   # cnn_output

    def cell(xin, w_ih, b_ih, b_hh):                      # h0 = c0 = 0
        gates = xin @ w_ih.T + b_ih + b_hh
        H = HIDDEN
        i = jax.nn.sigmoid(gates[:, 0:H])
        g = jnp.tanh(gates[:, 2 * H:3 * H])
        o = jax.nn.sigmoid(gates[:, 3 * H:4 * H])
        return o * jnp.tanh(i * g)

    h = x
    for layer in nat["lstm"]:
        h = jnp.concatenate([cell(h, *layer["fwd"]),
                             cell(h, *layer["bwd"])], axis=1)
    wfc, bfc = nat["fc"]
    return h @ wfc.T + bfc


# ----------------------------------- main ------------------------------------
if __name__ == "__main__":
    key = jax.random.PRNGKey(0)
    k_params, k_ids = jax.random.split(key)

    emb_table, nat_params = init_params(k_params)
    packed = pack_params(nat_params)

    input_ids = jax.random.randint(k_ids, (B, SEQ), 0, VOCAB)   # (B, S) int32
    # Embedding lookup (gather) stays in plain JAX glue.
    embedded = emb_table[input_ids]                             # (B, S, E) f32

    out = run_model(embedded, packed)
    out = jax.block_until_ready(out)

    ref = reference_forward(embedded, nat_params)
    assert out.shape == (B, NUM_CLASSES)
    assert jnp.allclose(out, ref, rtol=2e-3, atol=2e-3), (out, ref)

    print("KERNEL_OK")
</pallas_src>

<mosaic_0001>
module attributes {stable_mosaic.version = 11 : i64} {
  func.func @cnn_bilstm_kernel(%arg0: i32, %arg1: memref<8x16x32xf32, #tpu.memory_space<vmem>>, %arg2: memref<128x128xf32, #tpu.memory_space<vmem>>, %arg3: memref<8x128xf32, #tpu.memory_space<vmem>>) attributes {dimension_semantics = [#tpu.dimension_semantics<parallel>], iteration_bounds = array<i64: 1>, scalar_prefetch = 0 : i64, scratch_operands = 0 : i64, tpu.core_type = #tpu.core_type<tc>, window_params = [{transform_indices = @transform_0, window_bounds = array<i64: 8, 16, 32>}, {pipeline_mode = #tpu.pipeline_mode<synchronous>, transform_indices = @transform_1, window_bounds = array<i64: 128, 128>}, {transform_indices = @transform_2, window_bounds = array<i64: 8, 128>}]} {
    %c0 = arith.constant 0 : index
    %c0_0 = arith.constant 0 : index
    %c0_1 = arith.constant 0 : index
    %0 = vector.load %arg1[%c0, %c0_0, %c0_1] : memref<8x16x32xf32, #tpu.memory_space<vmem>>, vector<8x16x32xf32>
    %1 = vector.shape_cast %0 : vector<8x16x32xf32> to vector<128x32xf32>
    %c0_2 = arith.constant 0 : index
    %c0_3 = arith.constant 0 : index
    %2 = vector.load %arg2[%c0_2, %c0_3] : memref<128x128xf32, #tpu.memory_space<vmem>>, vector<32x128xf32>
    %cst = arith.constant dense<0.000000e+00> : vector<128x128xf32>
    %3 = tpu.matmul %1, %2, %cst {dimension_numbers = #tpu.dot_dimension_numbers<[1], [0], [0], [1], [0, 0, 1, 1], [], []>} : vector<128x32xf32>, vector<32x128xf32>, vector<128x128xf32> -> vector<128x128xf32>
    %4 = vector.shape_cast %3 : vector<128x128xf32> to vector<8x16x128xf32>
    %5 = vector.extract_strided_slice %4 {offsets = [0, 0, 0], sizes = [8, 14, 8], strides = [1, 1, 1]} : vector<8x16x128xf32> to vector<8x14x8xf32>
    %6 = vector.extract_strided_slice %4 {offsets = [0, 1, 8], sizes = [8, 14, 8], strides = [1, 1, 1]} : vector<8x16x128xf32> to vector<8x14x8xf32>
    %7 = arith.addf %5, %6 : vector<8x14x8xf32>
    %8 = vector.extract_strided_slice %4 {offsets = [0, 2, 16], sizes = [8, 14, 8], strides = [1, 1, 1]} : vector<8x16x128xf32> to vector<8x14x8xf32>
    %9 = arith.addf %7, %8 : vector<8x14x8xf32>
    %cst_4 = arith.constant dense<0xFF800000> : vector<8x8xf32>
    %10 = vector.multi_reduction <maximumf>, %9, %cst_4 [1] : vector<8x14x8xf32> to vector<8x8xf32>
    %11 = vector.extract_strided_slice %4 {offsets = [0, 0, 24], sizes = [8, 13, 8], strides = [1, 1, 1]} : vector<8x16x128xf32> to vector<8x13x8xf32>
    %12 = vector.extract_strided_slice %4 {offsets = [0, 1, 32], sizes = [8, 13, 8], strides = [1, 1, 1]} : vector<8x16x128xf32> to vector<8x13x8xf32>
    %13 = arith.addf %11, %12 : vector<8x13x8xf32>
    %14 = vector.extract_strided_slice %4 {offsets = [0, 2, 40], sizes = [8, 13, 8], strides = [1, 1, 1]} : vector<8x16x128xf32> to vector<8x13x8xf32>
    %15 = arith.addf %13, %14 : vector<8x13x8xf32>
    %16 = vector.extract_strided_slice %4 {offsets = [0, 3, 48], sizes = [8, 13, 8], strides = [1, 1, 1]} : vector<8x16x128xf32> to vector<8x13x8xf32>
    %17 = arith.addf %15, %16 : vector<8x13x8xf32>
    %cst_5 = arith.constant dense<0xFF800000> : vector<8x8xf32>
    %18 = vector.multi_reduction <maximumf>, %17, %cst_5 [1] : vector<8x13x8xf32> to vector<8x8xf32>
    %19 = vector.extract_strided_slice %4 {offsets = [0, 0, 56], sizes = [8, 12, 8], strides = [1, 1, 1]} : vector<8x16x128xf32> to vector<8x12x8xf32>
    %20 = vector.extract_strided_slice %4 {offsets = [0, 1, 64], sizes = [8, 12, 8], strides = [1, 1, 1]} : vector<8x16x128xf32> to vector<8x12x8xf32>
    %21 = arith.addf %19, %20 : vector<8x12x8xf32>
    %22 = vector.extract_strided_slice %4 {offsets = [0, 2, 72], sizes = [8, 12, 8], strides = [1, 1, 1]} : vector<8x16x128xf32> to vector<8x12x8xf32>
    %23 = arith.addf %21, %22 : vector<8x12x8xf32>
    %24 = vector.extract_strided_slice %4 {offsets = [0, 3, 80], sizes = [8, 12, 8], strides = [1, 1, 1]} : vector<8x16x128xf32> to vector<8x12x8xf32>
    %25 = arith.addf %23, %24 : vector<8x12x8xf32>
    %26 = vector.extract_strided_slice %4 {offsets = [0, 4, 88], sizes = [8, 12, 8], strides = [1, 1, 1]} : vector<8x16x128xf32> to vector<8x12x8xf32>
    %27 = arith.addf %25, %26 : vector<8x12x8xf32>
    %cst_6 = arith.constant dense<0xFF800000> : vector<8x8xf32>
    %28 = vector.multi_reduction <maximumf>, %27, %cst_6 [1] : vector<8x12x8xf32> to vector<8x8xf32>
    %29 = tpu.concatenate %10, %18, %28 in 1 : vector<8x8xf32>, vector<8x8xf32>, vector<8x8xf32> -> vector<8x24xf32>
    %c120 = arith.constant 120 : index
    %c0_7 = arith.constant 0 : index
    %30 = vector.load %arg2[%c120, %c0_7] : memref<128x128xf32, #tpu.memory_space<vmem>>, vector<8x128xf32>
    %31 = vector.extract_strided_slice %30 {offsets = [0, 0], sizes = [1, 24], strides = [1, 1]} : vector<8x128xf32> to vector<1x24xf32>
    %32 = vector.broadcast %31 : vector<1x24xf32> to vector<8x24xf32>
    %33 = arith.addf %29, %32 : vector<8x24xf32>
    %cst_8 = arith.constant 0.000000e+00 : f32
    %34 = vector.broadcast %cst_8 : f32 to vector<8x24xf32>
    %35 = arith.maximumf %33, %34 : vector<8x24xf32>
    %c32 = arith.constant 32 : index
    %c0_9 = arith.constant 0 : index
    %36 = vector.load %arg2[%c32, %c0_9] : memref<128x128xf32, #tpu.memory_space<vmem>>, vector<24x128xf32>
    %cst_10 = arith.constant dense<0.000000e+00> : vector<8x128xf32>
    %37 = tpu.matmul %35, %36, %cst_10 {dimension_numbers = #tpu.dot_dimension_numbers<[1], [0], [0], [1], [0, 0, 1, 1], [], []>} : vector<8x24xf32>, vector<24x128xf32>, vector<8x128xf32> -> vector<8x128xf32>
    %38 = vector.extract_strided_slice %30 {offsets = [1, 0], sizes = [1, 128], strides = [1, 1]} : vector<8x128xf32> to vector<1x128xf32>
    %39 = vector.broadcast %38 : vector<1x128xf32> to vector<8x128xf32>
    %40 = arith.addf %37, %39 : vector<8x128xf32>
    %41 = vector.extract_strided_slice %40 {offsets = [0, 0], sizes = [8, 32], strides = [1, 1]} : vector<8x128xf32> to vector<8x32xf32>
    %42 = arith.negf %41 : vector<8x32xf32>
    %43 = math.exp %42 : vector<8x32xf32>
    %cst_11 = arith.constant 1.000000e+00 : f32
    %44 = vector.broadcast %cst_11 : f32 to vector<8x32xf32>
    %45 = arith.addf %44, %43 : vector<8x32xf32>
    %46 = arith.divf %44, %45 : vector<8x32xf32>
    %47 = vector.extract_strided_slice %40 {offsets = [0, 64], sizes = [8, 32], strides = [1, 1]} : vector<8x128xf32> to vector<8x32xf32>
    %48 = math.tanh %47 : vector<8x32xf32>
    %49 = arith.mulf %46, %48 : vector<8x32xf32>
    %50 = vector.extract_strided_slice %40 {offsets = [0, 96], sizes = [8, 32], strides = [1, 1]} : vector<8x128xf32> to vector<8x32xf32>
    %51 = arith.negf %50 : vector<8x32xf32>
    %52 = math.exp %51 : vector<8x32xf32>
    %cst_12 = arith.constant 1.000000e+00 : f32
    %53 = vector.broadcast %cst_12 : f32 to vector<8x32xf32>
    %54 = arith.addf %53, %52 : vector<8x32xf32>
    %55 = arith.divf %53, %54 : vector<8x32xf32>
    %56 = math.tanh %49 : vector<8x32xf32>
    %57 = arith.mulf %55, %56 : vector<8x32xf32>
    %c56 = arith.constant 56 : index
    %c0_13 = arith.constant 0 : index
    %58 = vector.load %arg2[%c56, %c0_13] : memref<128x128xf32, #tpu.memory_space<vmem>>, vector<32x128xf32>
    %cst_14 = arith.constant dense<0.000000e+00> : vector<8x128xf32>
    %59 = tpu.matmul %57, %58, %cst_14 {dimension_numbers = #tpu.dot_dimension_numbers<[1], [0], [0], [1], [0, 0, 1, 1], [], []>} : vector<8x32xf32>, vector<32x128xf32>, vector<8x128xf32> -> vector<8x128xf32>
    %60 = vector.extract_strided_slice %30 {offsets = [2, 0], sizes = [1, 128], strides = [1, 1]} : vector<8x128xf32> to vector<1x128xf32>
    %61 = vector.broadcast %60 : vector<1x128xf32> to vector<8x128xf32>
    %62 = arith.addf %59, %61 : vector<8x128xf32>
    %63 = vector.extract_strided_slice %62 {offsets = [0, 0], sizes = [8, 32], strides = [1, 1]} : vector<8x128xf32> to vector<8x32xf32>
    %64 = arith.negf %63 : vector<8x32xf32>
    %65 = math.exp %64 : vector<8x32xf32>
    %cst_15 = arith.constant 1.000000e+00 : f32
    %66 = vector.broadcast %cst_15 : f32 to vector<8x32xf32>
    %67 = arith.addf %66, %65 : vector<8x32xf32>
    %68 = arith.divf %66, %67 : vector<8x32xf32>
    %69 = vector.extract_strided_slice %62 {offsets = [0, 64], sizes = [8, 32], strides = [1, 1]} : vector<8x128xf32> to vector<8x32xf32>
    %70 = math.tanh %69 : vector<8x32xf32>
    %71 = arith.mulf %68, %70 : vector<8x32xf32>
    %72 = vector.extract_strided_slice %62 {offsets = [0, 96], sizes = [8, 32], strides = [1, 1]} : vector<8x128xf32> to vector<8x32xf32>
    %73 = arith.negf %72 : vector<8x32xf32>
    %74 = math.exp %73 : vector<8x32xf32>
    %cst_16 = arith.constant 1.000000e+00 : f32
    %75 = vector.broadcast %cst_16 : f32 to vector<8x32xf32>
    %76 = arith.addf %75, %74 : vector<8x32xf32>
    %77 = arith.divf %75, %76 : vector<8x32xf32>
    %78 = math.tanh %71 : vector<8x32xf32>
    %79 = arith.mulf %77, %78 : vector<8x32xf32>
    %c88 = arith.constant 88 : index
    %c0_17 = arith.constant 0 : index
    %80 = vector.load %arg2[%c88, %c0_17] : memref<128x128xf32, #tpu.memory_space<vmem>>, vector<32x128xf32>
    %cst_18 = arith.constant dense<0.000000e+00> : vector<8x128xf32>
    %81 = tpu.matmul %79, %80, %cst_18 {dimension_numbers = #tpu.dot_dimension_numbers<[1], [0], [0], [1], [0, 0, 1, 1], [], []>} : vector<8x32xf32>, vector<32x128xf32>, vector<8x128xf32> -> vector<8x128xf32>
    %82 = vector.extract_strided_slice %30 {offsets = [3, 0], sizes = [1, 128], strides = [1, 1]} : vector<8x128xf32> to vector<1x128xf32>
    %83 = vector.broadcast %82 : vector<1x128xf32> to vector<8x128xf32>
    %84 = arith.addf %81, %83 : vector<8x128xf32>
    %c0_19 = arith.constant 0 : index
    %c0_20 = arith.constant 0 : index
    %85 = vector.load %arg3[%c0_19, %c0_20] : memref<8x128xf32, #tpu.memory_space<vmem>>, vector<8x128xf32>
    tpu.vector_store %arg3[%c0_19, %c0_20], %84 {strides = array<i32>} : memref<8x128xf32, #tpu.memory_space<vmem>>, vector<8x128xf32>,
    return
  }
  func.func @transform_0(%arg0: i32) -> (i32, i32, i32) {
    %c0_i32 = arith.constant 0 : i32
    %c0_i32_0 = arith.constant 0 : i32
    %c0_i32_1 = arith.constant 0 : i32
    return %arg0, %c0_i32, %c0_i32_0 : i32, i32, i32
  }
  func.func @transform_1(%arg0: i32) -> (i32, i32) {
    %c0_i32 = arith.constant 0 : i32
    %c0_i32_0 = arith.constant 0 : i32
    %c0_i32_1 = arith.constant 0 : i32
    return %c0_i32, %c0_i32_0 : i32, i32
  }
  func.func @transform_2(%arg0: i32) -> (i32, i32) {
    %c0_i32 = arith.constant 0 : i32
    %c0_i32_0 = arith.constant 0 : i32
    return %arg0, %c0_i32 : i32, i32
  }
}

</mosaic_0001>

<bundles_post_ra>
// kernel: tpu_custom_call.1
= control target key start
LH: loop header
LB: loop body
LE: loop exit
PB: predicated region body
PF: predicated region fallthrough
CT: control target
= control target key end

     0   :  { %7 = vsyncpa [#allocation3], 0  ;;  %s2012_s0 = inlined_call_operand.hbm [shape: f32[8,16,32], index: 0, kind: input, shape index: {}]   ;;  %s2013_s1 = inlined_call_operand.hbm [shape: f32[128,128], index: 1, kind: input, shape index: {}]   ;;  %s2014_s2 = inlined_call_operand.hbm [shape: f32[8,128], index: 2, kind: output, shape index: {}]  }
   0x1   :  { %8 = vsyncpa [#allocation6], 0 }
   0x2   :  { %9 = vsyncpa [#allocation4], 0  ;;  %s1465_s9 = smov [#allocation2]   ;;  %s1393_s13 = scalar_lea.hbm %s2012_s0, 2048 }
   0x3   :  { %s15_s10 = sshll.u32 %s1465_s9, 4  ;;  %p1394_p0 = scmp.ne.s32.totalorder %s2012_s0, %s1393_s13  ;;  %s16_s10 = int_to_ptr.vmem [resolvable:$true] %s15_s10 }
   0x4   :  { %p1397_p1 = scmp.lt.u32.totalorder %s1393_s13, %s2012_s0 }
   0x6   :  { %p1399_p2 = pnand %p1397_p1, %p1394_p0 }
   0x8   :  { %1402 = shalt.err (!%p1399_p2)
}
   0x9   :  { %s1403_s18 = scalar_lea.vmem %s16_s10, 2048  ;;  %p1408_p4 = scmp.lt.s32.totalorder %s16_s10, %s16_s10 }
   0xa   :  { %p1404_p3 = scmp.ne.s32.totalorder %s16_s10, %s1403_s18  ;;  %p1409_p5 = scmp.lt.s32.totalorder %s1403_s18, %s1403_s18 }
   0xc   :  { %p1410_p6 = por %p1409_p5, %p1408_p4 }
   0xe   :  { %p1411_p7 = pnand %p1410_p6, %p1404_p3 }
  0x10   :  { %1414 = shalt.err (!%p1411_p7)
}
  0x11   :  { %s1466_s19 = smov 128   ;;  %s1467_s20 = smov 8  }
  0x12   :  { %21 = dma.hbm_to_vmem [thread:$0]  %s2012_s0, 2048, %s16_s10, [#allocation3], %s1466_s19, %s1466_s19, %s1467_s20  }
  0x13   :  { %s1468_s23 = smov [#allocation5]   ;;  %s1415_s27 = scalar_lea.hbm %s2013_s1, 2048 }
  0x14   :  { %s27_s24 = sshll.u32 %s1468_s23, 4  ;;  %p1416_p8 = scmp.ne.s32.totalorder %s2013_s1, %s1415_s27  ;;  %s28_s24 = int_to_ptr.vmem [resolvable:$true] %s27_s24 }
  0x15   :  { %p1419_p9 = scmp.lt.u32.totalorder %s1415_s27, %s2013_s1 }
  0x17   :  { %p1421_p10 = pnand %p1419_p9, %p1416_p8 }
  0x19   :  { %1424 = shalt.err (!%p1421_p10)
}
  0x1a   :  { %s1425_s4 = scalar_lea.vmem %s28_s24, 2048  ;;  %p1430_p12 = scmp.lt.s32.totalorder %s28_s24, %s28_s24 }
  0x1b   :  { %p1426_p11 = scmp.ne.s32.totalorder %s28_s24, %s1425_s4  ;;  %p1431_p13 = scmp.lt.s32.totalorder %s1425_s4, %s1425_s4 }
  0x1d   :  { %p1432_p0 = por %p1431_p13, %p1430_p12 }
  0x1f   :  { %p1433_p1 = pnand %p1432_p0, %p1426_p11 }
  0x21   :  { %1436 = shalt.err (!%p1433_p1)
}
  0x22   :  { %33 = dma.hbm_to_vmem [thread:$0]  %s2013_s1, 2048, %s28_s24, [#allocation6], %s1466_s19, %s1466_s19, %s1467_s20  }
  0x23   :  { %1459 = dma.done.wait [#allocation3], 2048  }
  0x24   :  { %1460 = vsyncadd [#allocation3], 4294965248 }
  0x25   :  { %1461 = dma.done.wait [#allocation6], 2048  }
  0x26   :  { %1462 = vsyncadd [#allocation6], 4294965248  ;;  %vm60_vm0 = vcmask 261120   ;;  %v56_v0 = vld [vmem:[#allocation5] sm:$0xff]  ;;  %v57_v1 = vld [vmem:[#allocation5 + $0x8] sm:$0xff]  ;;  %vm270_vm1 = vcmask 1046528  }
  0x27   :  { %v58_v2 = vld [vmem:[#allocation5 + $0x10] sm:$0xff]  ;;  %v1335_v3 = vpack.c.bf16 %v57_v1, %v56_v0  ;;  %v59_v4 = vld [vmem:[#allocation5 + $0x18] sm:$0xff]  ;;  %v40_v5 = vld [vmem:[#allocation2] sm:$0xff]  ;;  %vm359_vm2 = vcmask 1045504   ;;  %vm522_vm3 = vcmask 1044480   ;;  %vm685_vm4 = vcmask 1043456  }
  0x28   :  { %v1339_v6 = vpack.c.bf16 %v59_v4, %v58_v2  ;;  %1280 = vmatprep.mubr.msk.f32.mxu0 %vm60_vm0, %v40_v5  ;;  %v54_v7 = vld [vmem:[#allocation2 + $0x70] sm:$0xff]  ;;  %v41_v8 = vld [vmem:[#allocation2 + $0x8] sm:$0xff]  ;;  %v55_v9 = vld [vmem:[#allocation2 + $0x78] sm:$0xff]  ;;  %s1469_s1 = smov 112   ;;  %s1470_s6 = smov 120   ;;  %vm448_vm5 = vcmask 64512  }
  0x29   :  { %1336 = vmatprep.subr.bf16.mxu0 %v1335_v3  ;;  %1358 = vmatprep.subr.bf16.mxu1 %v1335_v3  ;;  %v42_v10 = vld [vmem:[#allocation2 + $0x10] sm:$0xff]  ;;  %v43_v11 = vld [vmem:[#allocation2 + $0x18] sm:$0xff]  ;;  %v44_v12 = vld [vmem:[#allocation2 + $0x20] sm:$0xff]  ;;  %s1471_s7 = smov 104   ;;  %s1472_s8 = smov 96   ;;  %vm450_vm6 = vcmask 62464  }
  0x2a   :  { %1338 = vmatpush3.bf16.msra.mxu0 %v1335_v3  ;;  %1360 = vmatpush3.bf16.msra.mxu1 %v1335_v3  ;;  %v45_v13 = vld [vmem:[#allocation2 + $0x28] sm:$0xff]  ;;  %v46_v14 = vld [vmem:[#allocation2 + $0x30] sm:$0xff]  ;;  %v47_v15 = vld [vmem:[#allocation2 + $0x38] sm:$0xff]  ;;  %vm613_vm7 = vcmask 258240   ;;  %vm611_vm8 = vcmask 261312   ;;  %vm776_vm9 = vcmask 519616  }
  0x2b   :  { %1340 = vmatprep.subr.bf16.mxu0 %v1339_v6  ;;  %1359 = vmatprep.subr.bf16.mxu1 %v1339_v6  ;;  %v48_v16 = vld [vmem:[#allocation2 + $0x40] sm:$0xff]  ;;  %v49_v17 = vld [vmem:[#allocation2 + $0x48] sm:$0xff]  ;;  %v50_v18 = vld [vmem:[#allocation2 + $0x50] sm:$0xff]  ;;  %vm774_vm10 = vcmask 523712   ;;  %vm856_vm11 = vcmask 1041409   ;;  %vm858_vm12 = vcmask 1042434  }
  0x2c   :  { %1301 = vmatprep.mubr.msk.f32.mxu1 %vm60_vm0, %v54_v7  ;;  %v51_v19 = vld [vmem:[#allocation2 + $0x58] sm:$0xff]  ;;  %v52_v20 = vld [vmem:[#allocation2 + $0x60] sm:$0xff]  ;;  %v53_v21 = vld [vmem:[#allocation2 + $0x68] sm:$0xff]  ;;  %vm860_vm13 = vcmask 1043459   ;;  %vm862_vm14 = vcmask 1044484   ;;  %vm864_vm15 = vcmask 1045509  }
  0x2d   :  { %s1476_s9 = smov 88   ;;  %s1477_s10 = smov 64  }
  0x2e   :  { %1342 = vmatpush3.bf16.msra.mxu0 %v1339_v6  ;;  %1361 = vmatpush3.bf16.msra.mxu1 %v1339_v6  ;;  %s1478_s11 = smov 32   ;;  %s1479_s12 = smov [#allocation7]  }
  0x2f   :  { %s1207_s13 = sshll.u32 %s1479_s12, 4  ;;  %s1208_s13 = int_to_ptr.vmem [resolvable:$true] %s1207_s13 }
  0x30   :  { %s1437_s14 = scalar_lea.vmem %s1208_s13, 128  ;;  %p1442_p3 = scmp.lt.s32.totalorder %s1208_s13, %s1208_s13 }
  0x31   :  { %1281 = vmatmul.mubr.msk.f32.vlgmr.msra.gmra.mrb[0].mxu0 %vm60_vm0, %v41_v8  ;;  %1302 = vmatmul.mubr.msk.f32.vlgmr.msra.gmra.mrb[0].mxu1 %vm60_vm0, %v55_v9  ;;  %p1438_p2 = scmp.ne.s32.totalorder %s1208_s13, %s1437_s14  ;;  %p1443_p4 = scmp.lt.s32.totalorder %s1437_s14, %s1437_s14 }
  0x32   :  { %1283 = vmatprep.mubr.msk.f32.mxu0 %vm60_vm0, %v42_v10 }
  0x33   :  { %p1444_p5 = por %p1443_p4, %p1442_p3 }
  0x35   :  { %1284 = vmatmul.mubr.msk.f32.gmra.mrb[2].mxu0 %vm60_vm0, %v43_v11  ;;  %p1445_p6 = pnand %p1444_p5, %p1438_p2 }
  0x36   :  { %1286 = vmatprep.mubr.msk.f32.mxu0 %vm60_vm0, %v44_v12 }
  0x39   :  { %1287 = vmatmul.mubr.msk.f32.gmra.mrb[4].mxu0 %vm60_vm0, %v45_v13 }
  0x3a   :  { %1289 = vmatprep.mubr.msk.f32.mxu0 %vm60_vm0, %v46_v14 }
  0x3d   :  { %1290 = vmatmul.mubr.msk.f32.gmra.mrb[6].mxu0 %vm60_vm0, %v47_v15 }
  0x3e   :  { %1292 = vmatprep.mubr.msk.f32.mxu0 %vm60_vm0, %v48_v16 }
  0x41   :  { %1293 = vmatmul.mubr.msk.f32.gmra.mrb[8].mxu0 %vm60_vm0, %v49_v17 }
  0x42   :  { %1295 = vmatprep.mubr.msk.f32.mxu0 %vm60_vm0, %v50_v18 }
  0x45   :  { %1296 = vmatmul.mubr.msk.f32.gmra.mrb[10].mxu0 %vm60_vm0, %v51_v19 }
  0x46   :  { %1298 = vmatprep.mubr.msk.f32.mxu0 %vm60_vm0, %v52_v20 }
  0x49   :  { %1299 = vmatmul.mubr.msk.f32.gmra.mrb[12].mxu0 %vm60_vm0, %v53_v21 }
 0x104   :  { %v1535_v22 = vpop.f32.mrb[0].mxu0  ;;  %v1537_v23 = vpop.f32.mrb[0].mxu1 }
 0x105   :  { %v1539_v24 = vpop.f32.mrb[1].mxu0  ;;  %v361_v25 = vrot.slane %v1535_v22, 2  ;;  %v272_v26 = vrot.slane %v1535_v22, 1  ;;  %v524_v27 = vrot.slane %v1535_v22, 3  ;;  %v1544_v28 = vpop.f32.mrb[1].mxu1  ;;  %v293_v29 = vrot.slane %v1537_v23, 1 }
 0x106   :  { %v271_v30 = vrot.slane %v1539_v24, 1  ;;  %v360_v31 = vrot.slane %v1539_v24, 2  ;;  %v687_v32 = vrot.slane %v1535_v22, 4  ;;  %v523_v33 = vrot.slane %v1539_v24, 3 }
 0x107   :  { %386 = vrot.lane.b32.xlu1 %v361_v25, %s1469_s1  ;;  %297 = vrot.lane.b32.xlu0 %v272_v26, %s1470_s6  ;;  %v382_v34 = vrot.slane %v1537_v23, 2  ;;  %v292_v35 = vrot.slane %v1544_v28, 1  ;;  %v545_v36 = vrot.slane %v1537_v23, 3  ;;  %v686_v37 = vrot.slane %v1539_v24, 4 }
 0x108   :  { %v273_v38 = vsel %vm270_vm1, %v271_v30, %v272_v26  ;;  %v362_v39 = vsel %vm359_vm2, %v360_v31, %v361_v25  ;;  %v525_v40 = vsel %vm522_vm3, %v523_v33, %v524_v27  ;;  %v1560_v41 = vpop.f32.mrb[2].mxu0  ;;  %v381_v42 = vrot.slane %v1544_v28, 2 }
 0x109   :  { %v1564_v43 = vsel %vm270_vm1, %v292_v35, %v293_v29  ;;  %v1569_v44 = vsel %vm685_vm4, %v686_v37, %v687_v32  ;;  %v1571_v45 = vpop.f32.mrb[3].mxu0  ;;  %v275_v46 = vrot.slane %v1560_v41, 1  ;;  %v544_v47 = vrot.slane %v1544_v28, 3 }
 0x10a   :  { %v1578_v48 = vsel %vm359_vm2, %v381_v42, %v382_v34  ;;  %v364_v49 = vrot.slane %v1560_v41, 2  ;;  %v527_v50 = vrot.slane %v1560_v41, 3  ;;  %v363_v51 = vrot.slane %v1571_v45, 2 }
 0x10b   :  { %549 = vrot.lane.b32.xlu1 %v524_v27, %s1471_s7  ;;  %295 = vrot.lane.b32.xlu0 %v273_v38, %s1470_s6  ;;  %v1588_v52 = vsel %vm522_vm3, %v544_v47, %v545_v36  ;;  %v690_v53 = vrot.slane %v1560_v41, 4  ;;  %v526_v54 = vrot.slane %v1571_v45, 3  ;;  %v689_v55 = vrot.slane %v1571_v45, 4 }
 0x10c   :  { %v1596_v56 = vsel %vm359_vm2, %v363_v51, %v364_v49  ;;  %v1598_v57 = vpop.f32.mrb[4].mxu0  ;;  %v274_v58 = vrot.slane %v1571_v45, 1  ;;  %v2015_v59 = vrot.slane %v1537_v23, 4  ;;  %v707_v60 = vrot.slane %v1544_v28, 4 }
 0x10d   :  { %v1606_v61 = vsel %vm522_vm3, %v526_v54, %v527_v50  ;;  %v1608_v62 = vpop.f32.mrb[5].mxu0  ;;  %v1613_v63 = vsel %vm685_vm4, %v689_v55, %v690_v53  ;;  %v278_v0 = vrot.slane %v1598_v57, 1  ;;  %v367_v1 = vrot.slane %v1598_v57, 2 }
 0x10e   :  { %v1620_v2 = vsel %vm270_vm1, %v274_v58, %v275_v46  ;;  %v277_v3 = vrot.slane %v1608_v62, 1  ;;  %v366_v4 = vrot.slane %v1608_v62, 2  ;;  %v530_v5 = vrot.slane %v1598_v57, 3 }
 0x10f   :  { %325 = vrot.lane.b32.xlu1 %v293_v29, %s1470_s6  ;;  %384 = vrot.lane.b32.xlu0 %v362_v39, %s1469_s1  ;;  %v529_v6 = vrot.slane %v1608_v62, 3  ;;  %v693_v7 = vrot.slane %v1598_v57, 4  ;;  %v692_v8 = vrot.slane %v1608_v62, 4  ;;  %v1633_v9 = vsel %vm685_vm4, %v707_v60, %v2015_v59 }
 0x110   :  { %v1638_v10 = vsel %vm270_vm1, %v277_v3, %v278_v0  ;;  %v1643_v11 = vsel %vm359_vm2, %v366_v4, %v367_v1  ;;  %v1645_v12 = vpop.f32.mrb[6].mxu0 }
 0x111   :  { %v1650_v13 = vsel %vm522_vm3, %v529_v6, %v530_v5  ;;  %v1652_v14 = vpop.f32.mrb[7].mxu0  ;;  %v1657_v15 = vsel %vm685_vm4, %v692_v8, %v693_v7  ;;  %v281_v16 = vrot.slane %v1645_v12, 1  ;;  %v370_v17 = vrot.slane %v1645_v12, 2 }
 0x112   :  { %v280_v18 = vrot.slane %v1652_v14, 1  ;;  %v369_v19 = vrot.slane %v1652_v14, 2  ;;  %v2022_v20 = vrot.slane %v1645_v12, 3  ;;  %v532_v21 = vrot.slane %v1652_v14, 3 }
 0x113   :  { %712 = vrot.lane.b32.xlu1 %v687_v32, %s1472_s8  ;;  %547 = vrot.lane.b32.xlu0 %v525_v40, %s1471_s7  ;;  %v2021_v25 = vrot.slane %v1645_v12, 4  ;;  %v695_v26 = vrot.slane %v1652_v14, 4 }
 0x114   :  { %v1674_v27 = vsel %vm270_vm1, %v280_v18, %v281_v16  ;;  %v1679_v29 = vsel %vm359_vm2, %v369_v19, %v370_v17  ;;  %v1684_v30 = vsel %vm522_vm3, %v532_v21, %v2022_v20  ;;  %v1686_v31 = vpop.f32.mrb[8].mxu0 }
 0x115   :  { %v1688_v32 = vpop.f32.mrb[9].mxu0  ;;  %v1693_v33 = vsel %vm685_vm4, %v695_v26, %v2021_v25  ;;  %v2020_v35 = vrot.slane %v1686_v31, 1  ;;  %v2018_v37 = vrot.slane %v1686_v31, 2  ;;  %v2017_v38 = vrot.slane %v1686_v31, 3 }
 0x116   :  { %v283_v39 = vrot.slane %v1688_v32, 1  ;;  %v372_v40 = vrot.slane %v1688_v32, 2  ;;  %v535_v42 = vrot.slane %v1688_v32, 3  ;;  %v2016_v47 = vrot.slane %v1686_v31, 4 }
 0x117   :  { %414 = vrot.lane.b32.xlu1 %v382_v34, %s1469_s1  ;;  %323 = vrot.lane.b32.xlu0 %v1564_v43, %s1470_s6  ;;  %v698_v51 = vrot.slane %v1688_v32, 4 }
 0x118   :  { %v285_v54 = vsel %vm270_vm1, %v283_v39, %v2020_v35  ;;  %v374_v55 = vsel %vm359_vm2, %v372_v40, %v2018_v37  ;;  %v537_v58 = vsel %vm522_vm3, %v535_v42, %v2017_v38  ;;  %v1717_v60 = vpop.f32.mrb[10].mxu0 }
 0x119   :  { %v1719_v34 = vpop.f32.mrb[11].mxu0  ;;  %v700_v43 = vsel %vm685_vm4, %v698_v51, %v2016_v47  ;;  %v287_v3 = vrot.slane %v1717_v60, 1  ;;  %v376_v4 = vrot.slane %v1717_v60, 2  ;;  %v2019_v6 = vrot.slane %v1717_v60, 3 }
 0x11a   :  { %v286_v8 = vrot.slane %v1719_v34, 1  ;;  %v375_v18 = vrot.slane %v1719_v34, 2  ;;  %v538_v19 = vrot.slane %v1719_v34, 3  ;;  %v702_v21 = vrot.slane %v1717_v60, 4 }
 0x11b   :  { %577 = vrot.lane.b32.xlu1 %v545_v36, %s1471_s7  ;;  %710 = vrot.lane.b32.xlu0 %v1569_v44, %s1472_s8  ;;  %v701_v26 = vrot.slane %v1719_v34, 4 }
 0x11c   :  { %v288_v39 = vsel %vm270_vm1, %v286_v8, %v287_v3  ;;  %v377_v40 = vsel %vm359_vm2, %v375_v18, %v376_v4  ;;  %v540_v42 = vsel %vm522_vm3, %v538_v19, %v2019_v6  ;;  %v1742_v51 = vpop.f32.mrb[12].mxu0 }
 0x11d   :  { %v1744_v59 = vpop.f32.mrb[13].mxu0  ;;  %v703_v47 = vsel %vm685_vm4, %v701_v26, %v702_v21  ;;  %v290_v36 = vrot.slane %v1742_v51, 1  ;;  %v379_v44 = vrot.slane %v1742_v51, 2  ;;  %v542_v38 = vrot.slane %v1742_v51, 3 }
 0x11e   :  { %v289_v8 = vrot.slane %v1744_v59, 1  ;;  %v378_v18 = vrot.slane %v1744_v59, 2  ;;  %v541_v37 = vrot.slane %v1744_v59, 3  ;;  %v704_v19 = vrot.slane %v1744_v59, 4 }
 0x11f   :  { %412 = vrot.lane.b32.xlu0 %v1578_v48, %s1469_s1  ;;  %301 = vrot.lane.b32.xlu1 %v275_v46, %s1470_s6  ;;  %v705_v26 = vrot.slane %v1742_v51, 4  ;;  %v2023_v46 = vrot.slane %v1645_v12, 3  ;;  %v2024_v48 = vrot.slane %v1645_v12, 4 }
 0x120   :  { %v291_v6 = vsel %vm270_vm1, %v289_v8, %v290_v36  ;;  %v380_v35 = vsel %vm359_vm2, %v378_v18, %v379_v44  ;;  %v543_v25 = vsel %vm522_vm3, %v541_v37, %v542_v38  ;;  %vm866_vm1 = vcmask 1046534  }
 0x121   :  { %v706_v20 = vsel %vm685_vm4, %v704_v19, %v705_v26  ;;  %vm868_vm2 = vcmask 1047559   ;;  %vm1475_vm3 = vmmov 0   ;;  %vm908_vm4 = vcmask 130048  }
 0x123   :  { %575 = vrot.lane.b32.xlu0 %v1588_v52, %s1471_s7  ;;  %390 = vrot.lane.b32.xlu1 %v364_v49, %s1469_s1  ;;  %v2025_v49 = vrot.slane %v1686_v31, 1  ;;  %v2027_v52 = vrot.slane %v1686_v31, 3 }
 0x127   :  { %553 = vrot.lane.b32.xlu1 %v527_v50, %s1471_s7  ;;  %388 = vrot.lane.b32.xlu0 %v1596_v56, %s1469_s1  ;;  %v2026_v50 = vrot.slane %v1686_v31, 2  ;;  %v2029_v56 = vrot.slane %v1717_v60, 3 }
 0x12b   :  { %716 = vrot.lane.b32.xlu1 %v690_v53, %s1472_s8  ;;  %551 = vrot.lane.b32.xlu0 %v1606_v61, %s1471_s7  ;;  %v2028_v53 = vrot.slane %v1686_v31, 4 }
 0x12f   :  { %714 = vrot.lane.b32.xlu0 %v1613_v63, %s1472_s8  ;;  %299 = vrot.lane.b32.xlu1 %v1620_v2, %s1470_s6 }
 0x133   :  { %305 = vrot.lane.b32.xlu1 %v278_v0, %s1470_s6  ;;  %303 = vrot.lane.b32.xlu0 %v1638_v10, %s1470_s6 }
 0x137   :  { %394 = vrot.lane.b32.xlu1 %v367_v1, %s1469_s1  ;;  %392 = vrot.lane.b32.xlu0 %v1643_v11, %s1469_s1 }
 0x13b   :  { %557 = vrot.lane.b32.xlu1 %v530_v5, %s1471_s7  ;;  %555 = vrot.lane.b32.xlu0 %v1650_v13, %s1471_s7 }
 0x13f   :  { %720 = vrot.lane.b32.xlu1 %v693_v7, %s1472_s8  ;;  %718 = vrot.lane.b32.xlu0 %v1657_v15, %s1472_s8 }
 0x143   :  { %309 = vrot.lane.b32.xlu1 %v281_v16, %s1470_s6  ;;  %307 = vrot.lane.b32.xlu0 %v1674_v27, %s1470_s6  ;;  %v2030_v16 = vrot.slane %v1537_v23, 4 }
 0x147   :  { %398 = vrot.lane.b32.xlu1 %v370_v17, %s1469_s1  ;;  %396 = vrot.lane.b32.xlu0 %v1679_v29, %s1469_s1 }
 0x14b   :  { %561 = vrot.lane.b32.xlu1 %v2023_v46, %s1471_s7  ;;  %559 = vrot.lane.b32.xlu0 %v1684_v30, %s1471_s7 }
 0x14f   :  { %724 = vrot.lane.b32.xlu1 %v2024_v48, %s1472_s8  ;;  %722 = vrot.lane.b32.xlu0 %v1693_v33, %s1472_s8 }
 0x153   :  { %313 = vrot.lane.b32.xlu1 %v2025_v49, %s1470_s6  ;;  %311 = vrot.lane.b32.xlu0 %v285_v54, %s1470_s6 }
 0x157   :  { %402 = vrot.lane.b32.xlu1 %v2026_v50, %s1469_s1  ;;  %400 = vrot.lane.b32.xlu0 %v374_v55, %s1469_s1 }
 0x15b   :  { %565 = vrot.lane.b32.xlu1 %v2027_v52, %s1471_s7  ;;  %563 = vrot.lane.b32.xlu0 %v537_v58, %s1471_s7 }
 0x15f   :  { %728 = vrot.lane.b32.xlu1 %v2028_v53, %s1472_s8  ;;  %726 = vrot.lane.b32.xlu0 %v700_v43, %s1472_s8 }
 0x163   :  { %317 = vrot.lane.b32.xlu1 %v287_v3, %s1470_s6  ;;  %315 = vrot.lane.b32.xlu0 %v288_v39, %s1470_s6 }
 0x167   :  { %406 = vrot.lane.b32.xlu1 %v376_v4, %s1469_s1  ;;  %404 = vrot.lane.b32.xlu0 %v377_v40, %s1469_s1 }
 0x16b   :  { %569 = vrot.lane.b32.xlu1 %v2029_v56, %s1471_s7  ;;  %567 = vrot.lane.b32.xlu0 %v540_v42, %s1471_s7 }
 0x16f   :  { %732 = vrot.lane.b32.xlu1 %v702_v21, %s1472_s8  ;;  %730 = vrot.lane.b32.xlu0 %v703_v47, %s1472_s8 }
 0x173   :  { %321 = vrot.lane.b32.xlu1 %v290_v36, %s1470_s6  ;;  %319 = vrot.lane.b32.xlu0 %v291_v6, %s1470_s6 }
 0x177   :  { %410 = vrot.lane.b32.xlu1 %v379_v44, %s1469_s1  ;;  %408 = vrot.lane.b32.xlu0 %v380_v35, %s1469_s1 }
 0x179   :  { %v387_v61 = vpop.permute.xlu1 %386  ;;  %v298_v63 = vpop.permute.xlu0 %297 }
 0x17a   :  { %v344_v0 = vadd.f32 %v1535_v22, %v298_v63 }
 0x17b   :  { %573 = vrot.lane.b32.xlu1 %v542_v38, %s1471_s7  ;;  %571 = vrot.lane.b32.xlu0 %v543_v25, %s1471_s7 }
 0x17c   :  { %v433_v1 = vadd.f32 %v387_v61, %v344_v0 }
 0x17d   :  { %v550_v2 = vpop.permute.xlu1 %549  ;;  %v296_v5 = vpop.permute.xlu0 %295 }
 0x17e   :  { %v596_v7 = vadd.f32 %v550_v2, %v433_v1  ;;  %v343_v10 = vadd.f32 %v296_v5, %v1539_v24  ;;  %v451_v24 = vsel %vm450_vm6, %v433_v1, -inf }
 0x17f   :  { %736 = vrot.lane.b32.xlu1 %v705_v26, %s1472_s8  ;;  %734 = vrot.lane.b32.xlu0 %v706_v20, %s1472_s8 }
 0x180   :  { %v614_v33 = vsel %vm613_vm7, %v596_v7, -inf }
 0x181   :  { %v326_v11 = vpop.permute.xlu1 %325  ;;  %v385_v13 = vpop.permute.xlu0 %384 }
 0x182   :  { %v358_v22 = vadd.f32 %v1537_v23, %v326_v11  ;;  %v432_v15 = vadd.f32 %v385_v13, %v343_v10 }
 0x183   :  { %740 = vrot.lane.b32.xlu1 %v2030_v16, %s1472_s8  ;;  %738 = vrot.lane.b32.xlu0 %v1633_v9, %s1472_s8 }
 0x184   :  { %v449_v17 = vsel %vm448_vm5, %v432_v15, -inf }
 0x185   :  { %v452_v20 = vmax.f32 %v449_v17, %v451_v24  ;;  %v713_v25 = vpop.permute.xlu1 %712  ;;  %v548_v27 = vpop.permute.xlu0 %547 }
 0x186   :  { %v759_v29 = vadd.f32 %v713_v25, %v596_v7  ;;  %v595_v30 = vadd.f32 %v548_v27, %v432_v15 }
 0x187   :  { %v453_v53 = vrot.slane %v452_v20, 4 }
 0x188   :  { %v612_v35 = vsel %vm611_vm8, %v595_v30, -inf  ;;  %v777_v3 = vsel %vm776_vm9, %v759_v29, -inf }
 0x189   :  { %v615_v23 = vmax.f32 %v612_v35, %v614_v33  ;;  %v415_v37 = vpop.permute.xlu1 %414  ;;  %v324_v38 = vpop.permute.xlu0 %323  ;;  %v454_v0 = vmax.f32 %v452_v20, %v453_v53 }
 0x18a   :  { %v447_v47 = vadd.f32 %v415_v37, %v358_v22  ;;  %v357_v9 = vadd.f32 %v324_v38, %v1544_v28 }
 0x18b   :  { %v616_v1 = vrot.slane %v615_v23, 4  ;;  %v455_v11 = vrot.slane %v454_v0, 2 }
 0x18c   :  { %v514_v36 = vsel %vm450_vm6, %v447_v47, -inf }
 0x18d   :  { %v578_v54 = vpop.permute.xlu1 %577  ;;  %v711_v55 = vpop.permute.xlu0 %710  ;;  %v617_v13 = vmax.f32 %v615_v23, %v616_v1 }
 0x18e   :  { %v1870_v58 = vadd.f32 %v578_v54, %v447_v47  ;;  %v758_v43 = vadd.f32 %v711_v55, %v595_v30  ;;  %v456_v30 = vmax.f32 %v454_v0, %v455_v11 }
 0x18f   :  { %v618_v35 = vrot.slane %v617_v13, 2 }
 0x190   :  { %v775_v4 = vsel %vm774_vm10, %v758_v43, -inf  ;;  %v677_v46 = vsel %vm613_vm7, %v1870_v58, -inf }
 0x191   :  { %v778_v6 = vmax.f32 %v775_v4, %v777_v3  ;;  %v413_v21 = vpop.permute.xlu0 %412  ;;  %v302_v39 = vpop.permute.xlu1 %301 }
 0x192   :  { %v446_v40 = vadd.f32 %v413_v21, %v357_v9  ;;  %v346_v42 = vadd.f32 %v1560_v41, %v302_v39  ;;  %v457_v39 = vrot.slane %v456_v30, 1 }
 0x193   :  { %v779_v2 = vrot.slane %v778_v6, 4 }
 0x194   :  { %v513_v28 = vsel %vm448_vm5, %v446_v40, -inf  ;;  %v458_v0 = vmax.f32 %v456_v30, %v457_v39 }
 0x195   :  { %v1877_v44 = vmax.f32 %v513_v28, %v514_v36  ;;  %v576_v8 = vpop.permute.xlu0 %575  ;;  %v391_v18 = vpop.permute.xlu1 %390  ;;  %v780_v15 = vmax.f32 %v778_v6, %v779_v2 }
 0x196   :  { %v1879_v19 = vadd.f32 %v576_v8, %v446_v40  ;;  %v435_v26 = vadd.f32 %v391_v18, %v346_v42  ;;  %v619_v40 = vmax.f32 %v617_v13, %v618_v35 }
 0x197   :  { %v781_v38 = vrot.slane %v780_v15, 2 }
 0x198   :  { %v676_v48 = vsel %vm611_vm8, %v1879_v19, -inf  ;;  %v460_v16 = vsel %vm450_vm6, %v435_v26, -inf  ;;  %v620_v1 = vrot.slane %v619_v40, 1 }
 0x199   :  { %v1885_v49 = vmax.f32 %v676_v48, %v677_v46  ;;  %v554_v41 = vpop.permute.xlu1 %553  ;;  %v389_v50 = vpop.permute.xlu0 %388 }
 0x19a   :  { %v598_v52 = vadd.f32 %v554_v41, %v435_v26  ;;  %v782_v41 = vmax.f32 %v780_v15, %v781_v38  ;;  %v621_v30 = vmax.f32 %v619_v40, %v620_v1 }
 0x19c   :  { %v783_v15 = vrot.slane %v782_v41, 1 }
 0x19d   :  { %v717_v56 = vpop.permute.xlu1 %716  ;;  %v552_v61 = vpop.permute.xlu0 %551 }
 0x19e   :  { %v761_v63 = vadd.f32 %v717_v56, %v598_v52 }
 0x1a0   :  { %v786_v43 = vsel %vm776_vm9, %v761_v63, -inf }
 0x1a1   :  { %v715_v5 = vpop.permute.xlu0 %714  ;;  %v300_v7 = vpop.permute.xlu1 %299 }
 0x1a2   :  { %v345_v10 = vadd.f32 %v300_v7, %v1571_v45  ;;  %v623_v45 = vsel %vm613_vm7, %v598_v52, -inf }
 0x1a4   :  { %v434_v22 = vadd.f32 %v389_v50, %v345_v10 }
 0x1a5   :  { %v306_v24 = vpop.permute.xlu1 %305  ;;  %v304_v17 = vpop.permute.xlu0 %303 }
 0x1a6   :  { %v459_v25 = vsel %vm448_vm5, %v434_v22, -inf  ;;  %v597_v27 = vadd.f32 %v552_v61, %v434_v22  ;;  %v348_v29 = vadd.f32 %v1598_v57, %v306_v24  ;;  %v347_v20 = vadd.f32 %v304_v17, %v1608_v62 }
 0x1a7   :  { %v461_v33 = vmax.f32 %v459_v25, %v460_v16 }
 0x1a8   :  { %v622_v23 = vsel %vm611_vm8, %v597_v27, -inf  ;;  %v760_v37 = vadd.f32 %v715_v5, %v597_v27 }
 0x1a9   :  { %v462_v47 = vrot.slane %v461_v33, 4  ;;  %v624_v9 = vmax.f32 %v622_v23, %v623_v45  ;;  %v395_v54 = vpop.permute.xlu1 %394  ;;  %v393_v55 = vpop.permute.xlu0 %392 }
 0x1aa   :  { %v785_v3 = vsel %vm774_vm10, %v760_v37, -inf  ;;  %v437_v57 = vadd.f32 %v395_v54, %v348_v29  ;;  %v436_v4 = vadd.f32 %v393_v55, %v347_v20 }
 0x1ab   :  { %v463_v62 = vmax.f32 %v461_v33, %v462_v47  ;;  %v625_v6 = vrot.slane %v624_v9, 4  ;;  %v787_v21 = vmax.f32 %v785_v3, %v786_v43 }
 0x1ac   :  { %v469_v42 = vsel %vm450_vm6, %v437_v57, -inf  ;;  %v468_v36 = vsel %vm448_vm5, %v436_v4, -inf }
 0x1ad   :  { %v464_v28 = vrot.slane %v463_v62, 2  ;;  %v626_v8 = vmax.f32 %v624_v9, %v625_v6  ;;  %v788_v18 = vrot.slane %v787_v21, 4  ;;  %v470_v26 = vmax.f32 %v468_v36, %v469_v42  ;;  %v558_v46 = vpop.permute.xlu1 %557  ;;  %v556_v48 = vpop.permute.xlu0 %555 }
 0x1ae   :  { %v600_v50 = vadd.f32 %v558_v46, %v437_v57  ;;  %v599_v52 = vadd.f32 %v556_v48, %v436_v4  ;;  %v784_v57 = vmax.f32 %v782_v41, %v783_v15 }
 0x1af   :  { %v465_v53 = vmax.f32 %v463_v62, %v464_v28  ;;  %v627_v56 = vrot.slane %v626_v8, 2  ;;  %v789_v61 = vmax.f32 %v787_v21, %v788_v18  ;;  %v471_v63 = vrot.slane %v470_v26, 4 }
 0x1b0   :  { %v632_v2 = vsel %vm613_vm7, %v600_v50, -inf  ;;  %v631_v5 = vsel %vm611_vm8, %v599_v52, -inf }
 0x1b1   :  { %v466_v7 = vrot.slane %v465_v53, 1  ;;  %v628_v10 = vmax.f32 %v626_v8, %v627_v56  ;;  %v790_v11 = vrot.slane %v789_v61, 2  ;;  %v472_v13 = vmax.f32 %v470_v26, %v471_v63  ;;  %v721_v22 = vpop.permute.xlu1 %720  ;;  %v719_v16 = vpop.permute.xlu0 %718 }
 0x1b2   :  { %v633_v24 = vmax.f32 %v631_v5, %v632_v2  ;;  %v763_v17 = vadd.f32 %v721_v22, %v600_v50  ;;  %v762_v25 = vadd.f32 %v719_v16, %v599_v52 }
 0x1b3   :  { %v467_v27 = vmax.f32 %v465_v53, %v466_v7  ;;  %v629_v29 = vrot.slane %v628_v10, 1  ;;  %v791_v20 = vmax.f32 %v789_v61, %v790_v11  ;;  %v473_v33 = vrot.slane %v472_v13, 2 }
 0x1b4   :  { %v634_v35 = vrot.slane %v633_v24, 4  ;;  %v795_v45 = vsel %vm776_vm9, %v763_v17, -inf  ;;  %v794_v23 = vsel %vm774_vm10, %v762_v25, -inf }
 0x1b5   :  { %v630_v37 = vmax.f32 %v628_v10, %v629_v29  ;;  %v792_v38 = vrot.slane %v791_v20, 1  ;;  %v857_v47 = vsel %vm856_vm11, %v467_v27, %v458_v0  ;;  %v474_v9 = vmax.f32 %v472_v13, %v473_v33  ;;  %v310_v54 = vpop.permute.xlu1 %309  ;;  %v308_v55 = vpop.permute.xlu0 %307 }
 0x1b6   :  { %v635_v43 = vmax.f32 %v633_v24, %v634_v35  ;;  %v796_v3 = vmax.f32 %v794_v23, %v795_v45  ;;  %v350_v40 = vadd.f32 %v1645_v12, %v310_v54  ;;  %v349_v42 = vadd.f32 %v308_v55, %v1652_v14 }
 0x1b7   :  { %v793_v4 = vmax.f32 %v791_v20, %v792_v38  ;;  %v475_v62 = vrot.slane %v474_v9, 1  ;;  %v879_v6 = vsel %vm856_vm11, %v630_v37, %v621_v30 }
 0x1b8   :  { %v636_v21 = vrot.slane %v635_v43, 2  ;;  %v797_v39 = vrot.slane %v796_v3, 4 }
 0x1b9   :  { %v476_v36 = vmax.f32 %v474_v9, %v475_v62  ;;  %v399_v28 = vpop.permute.xlu1 %398  ;;  %v397_v8 = vpop.permute.xlu0 %396  ;;  %v897_v18 = vsel %vm856_vm11, %v793_v4, %v784_v57 }
 0x1ba   :  { %v637_v26 = vmax.f32 %v635_v43, %v636_v21  ;;  %v798_v46 = vmax.f32 %v796_v3, %v797_v39  ;;  %v439_v48 = vadd.f32 %v399_v28, %v350_v40  ;;  %v438_v50 = vadd.f32 %v397_v8, %v349_v42 }
 0x1bb   :  { %v859_v41 = vsel %vm858_vm12, %v476_v36, %v857_v47 }
 0x1bc   :  { %v638_v52 = vrot.slane %v637_v26, 1  ;;  %v799_v53 = vrot.slane %v798_v46, 2  ;;  %v478_v56 = vsel %vm450_vm6, %v439_v48, -inf  ;;  %v477_v61 = vsel %vm448_vm5, %v438_v50, -inf }
 0x1bd   :  { %v479_v12 = vmax.f32 %v477_v61, %v478_v56  ;;  %v562_v63 = vpop.permute.xlu1 %561  ;;  %v560_v14 = vpop.permute.xlu0 %559 }
 0x1be   :  { %v639_v0 = vmax.f32 %v637_v26, %v638_v52  ;;  %v800_v1 = vmax.f32 %v798_v46, %v799_v53  ;;  %v602_v2 = vadd.f32 %v562_v63, %v439_v48  ;;  %v601_v5 = vadd.f32 %v560_v14, %v438_v50 }
 0x1bf   :  { %v480_v7 = vrot.slane %v479_v12, 4 }
 0x1c0   :  { %v801_v10 = vrot.slane %v800_v1, 1  ;;  %v641_v11 = vsel %vm613_vm7, %v602_v2, -inf  ;;  %v640_v13 = vsel %vm611_vm8, %v601_v5, -inf  ;;  %v880_v22 = vsel %vm858_vm12, %v639_v0, %v879_v6 }
 0x1c1   :  { %v481_v16 = vmax.f32 %v479_v12, %v480_v7  ;;  %v642_v15 = vmax.f32 %v640_v13, %v641_v11  ;;  %v725_v24 = vpop.permute.xlu1 %724  ;;  %v723_v17 = vpop.permute.xlu0 %722 }
 0x1c2   :  { %v802_v25 = vmax.f32 %v800_v1, %v801_v10  ;;  %v765_v27 = vadd.f32 %v725_v24, %v602_v2  ;;  %v764_v29 = vadd.f32 %v723_v17, %v601_v5 }
 0x1c3   :  { %v482_v20 = vrot.slane %v481_v16, 2  ;;  %v643_v33 = vrot.slane %v642_v15, 4 }
 0x1c4   :  { %v804_v30 = vsel %vm776_vm9, %v765_v27, -inf  ;;  %v803_v35 = vsel %vm774_vm10, %v764_v29, -inf  ;;  %v898_v45 = vsel %vm858_vm12, %v802_v25, %v897_v18 }
 0x1c5   :  { %v483_v23 = vmax.f32 %v481_v16, %v482_v20  ;;  %v644_v37 = vmax.f32 %v642_v15, %v643_v33  ;;  %v805_v38 = vmax.f32 %v803_v35, %v804_v30  ;;  %v314_v47 = vpop.permute.xlu1 %313  ;;  %v312_v9 = vpop.permute.xlu0 %311 }
 0x1c6   :  { %v352_v3 = vadd.f32 %v1686_v31, %v314_v47  ;;  %v351_v57 = vadd.f32 %v312_v9, %v1688_v32 }
 0x1c7   :  { %v484_v54 = vrot.slane %v483_v23, 1  ;;  %v645_v55 = vrot.slane %v644_v37, 2  ;;  %v806_v43 = vrot.slane %v805_v38, 4 }
 0x1c9   :  { %v485_v4 = vmax.f32 %v483_v23, %v484_v54  ;;  %v646_v62 = vmax.f32 %v644_v37, %v645_v55  ;;  %v807_v6 = vmax.f32 %v805_v38, %v806_v43  ;;  %v403_v21 = vpop.permute.xlu1 %402  ;;  %v401_v39 = vpop.permute.xlu0 %400 }
 0x1ca   :  { %v441_v40 = vadd.f32 %v403_v21, %v352_v3  ;;  %v440_v42 = vadd.f32 %v401_v39, %v351_v57 }
 0x1cb   :  { %v647_v36 = vrot.slane %v646_v62, 1  ;;  %v808_v28 = vrot.slane %v807_v6, 2  ;;  %v861_v8 = vsel %vm860_vm13, %v485_v4, %v859_v41 }
 0x1cc   :  { %v487_v18 = vsel %vm450_vm6, %v441_v40, -inf  ;;  %v486_v26 = vsel %vm448_vm5, %v440_v42, -inf }
 0x1cd   :  { %v648_v46 = vmax.f32 %v646_v62, %v647_v36  ;;  %v809_v31 = vmax.f32 %v807_v6, %v808_v28  ;;  %v488_v48 = vmax.f32 %v486_v26, %v487_v18  ;;  %v566_v32 = vpop.permute.xlu1 %565  ;;  %v564_v50 = vpop.permute.xlu0 %563 }
 0x1ce   :  { %v604_v52 = vadd.f32 %v566_v32, %v441_v40  ;;  %v603_v53 = vadd.f32 %v564_v50, %v440_v42 }
 0x1cf   :  { %v810_v56 = vrot.slane %v809_v31, 1  ;;  %v489_v61 = vrot.slane %v488_v48, 4  ;;  %v881_v12 = vsel %vm860_vm13, %v648_v46, %v880_v22 }
 0x1d0   :  { %v650_v63 = vsel %vm613_vm7, %v604_v52, -inf  ;;  %v649_v14 = vsel %vm611_vm8, %v603_v53, -inf }
 0x1d1   :  { %v811_v41 = vmax.f32 %v809_v31, %v810_v56  ;;  %v490_v0 = vmax.f32 %v488_v48, %v489_v61  ;;  %v651_v1 = vmax.f32 %v649_v14, %v650_v63  ;;  %v729_v2 = vpop.permute.xlu1 %728  ;;  %v727_v5 = vpop.permute.xlu0 %726 }
 0x1d2   :  { %v767_v7 = vadd.f32 %v729_v2, %v604_v52  ;;  %v766_v10 = vadd.f32 %v727_v5, %v603_v53 }
 0x1d3   :  { %v491_v11 = vrot.slane %v490_v0, 2  ;;  %v652_v13 = vrot.slane %v651_v1, 4  ;;  %v899_v16 = vsel %vm860_vm13, %v811_v41, %v898_v45 }
 0x1d4   :  { %v813_v15 = vsel %vm776_vm9, %v767_v7, -inf  ;;  %v812_v24 = vsel %vm774_vm10, %v766_v10, -inf  ;;  %v516_v7 = vrot.slane %v1877_v44, 4 }
 0x1d5   :  { %v492_v22 = vmax.f32 %v490_v0, %v491_v11  ;;  %v653_v17 = vmax.f32 %v651_v1, %v652_v13  ;;  %v814_v25 = vmax.f32 %v812_v24, %v813_v15  ;;  %v318_v27 = vpop.permute.xlu1 %317  ;;  %v316_v29 = vpop.permute.xlu0 %315 }
 0x1d6   :  { %v354_v35 = vadd.f32 %v1717_v60, %v318_v27  ;;  %v353_v23 = vadd.f32 %v316_v29, %v1719_v34  ;;  %v517_v29 = vmax.f32 %v1877_v44, %v516_v7 }
 0x1d7   :  { %v493_v20 = vrot.slane %v492_v22, 1  ;;  %v654_v33 = vrot.slane %v653_v17, 2  ;;  %v815_v30 = vrot.slane %v814_v25, 4 }
 0x1d9   :  { %v494_v37 = vmax.f32 %v492_v22, %v493_v20  ;;  %v655_v38 = vmax.f32 %v653_v17, %v654_v33  ;;  %v816_v45 = vmax.f32 %v814_v25, %v815_v30  ;;  %v407_v47 = vpop.permute.xlu1 %406  ;;  %v405_v9 = vpop.permute.xlu0 %404  ;;  %v679_v20 = vrot.slane %v1885_v49, 4 }
 0x1da   :  { %v443_v54 = vadd.f32 %v407_v47, %v354_v35  ;;  %v442_v55 = vadd.f32 %v405_v9, %v353_v23 }
 0x1db   :  { %v656_v43 = vrot.slane %v655_v38, 1  ;;  %v817_v3 = vrot.slane %v816_v45, 2  ;;  %v863_v57 = vsel %vm862_vm14, %v494_v37, %v861_v8  ;;  %v680_v44 = vmax.f32 %v1885_v49, %v679_v20 }
 0x1dc   :  { %v496_v4 = vsel %vm450_vm6, %v443_v54, -inf  ;;  %v495_v62 = vsel %vm448_vm5, %v442_v55, -inf }
 0x1dd   :  { %v657_v6 = vmax.f32 %v655_v38, %v656_v43  ;;  %v818_v60 = vmax.f32 %v816_v45, %v817_v3  ;;  %v497_v21 = vmax.f32 %v495_v62, %v496_v4  ;;  %v570_v34 = vpop.permute.xlu1 %569  ;;  %v568_v39 = vpop.permute.xlu0 %567 }
 0x1de   :  { %v606_v40 = vadd.f32 %v570_v34, %v443_v54  ;;  %v605_v42 = vadd.f32 %v568_v39, %v442_v55  ;;  %v518_v55 = vrot.slane %v517_v29, 2 }
 0x1df   :  { %v819_v36 = vrot.slane %v818_v60, 1  ;;  %v498_v28 = vrot.slane %v497_v21, 4  ;;  %v882_v18 = vsel %vm862_vm14, %v657_v6, %v881_v12 }
 0x1e0   :  { %v659_v26 = vsel %vm613_vm7, %v606_v40, -inf  ;;  %v658_v46 = vsel %vm611_vm8, %v605_v42, -inf }
 0x1e1   :  { %v820_v8 = vmax.f32 %v818_v60, %v819_v36  ;;  %v499_v31 = vmax.f32 %v497_v21, %v498_v28  ;;  %v660_v48 = vmax.f32 %v658_v46, %v659_v26  ;;  %v733_v32 = vpop.permute.xlu1 %732  ;;  %v731_v50 = vpop.permute.xlu0 %730  ;;  %v519_v36 = vmax.f32 %v517_v29, %v518_v55 }
 0x1e2   :  { %v769_v52 = vadd.f32 %v733_v32, %v606_v40  ;;  %v768_v53 = vadd.f32 %v731_v50, %v605_v42  ;;  %v681_v28 = vrot.slane %v680_v44, 2  ;;  %v917_v32 = vld [vmem:[#allocation5 + $0x20] sm:$0xff]  ;;  %v918_v50 = vld [vmem:[#allocation5 + $0x28] sm:$0xff] }
 0x1e3   :  { %v500_v56 = vrot.slane %v499_v31, 2  ;;  %v661_v61 = vrot.slane %v660_v48, 4  ;;  %v900_v63 = vsel %vm862_vm14, %v820_v8, %v899_v16 }
 0x1e4   :  { %v822_v14 = vsel %vm776_vm9, %v769_v52, -inf  ;;  %v821_v41 = vsel %vm774_vm10, %v768_v53, -inf }
 0x1e5   :  { %v501_v12 = vmax.f32 %v499_v31, %v500_v56  ;;  %v662_v0 = vmax.f32 %v660_v48, %v661_v61  ;;  %v823_v1 = vmax.f32 %v821_v41, %v822_v14  ;;  %v322_v2 = vpop.permute.xlu1 %321  ;;  %v320_v5 = vpop.permute.xlu0 %319  ;;  %v1473_v41 = vmov 0.0|0.0  }
 0x1e6   :  { %v356_v15 = vadd.f32 %v1742_v51, %v322_v2  ;;  %v355_v24 = vadd.f32 %v320_v5, %v1744_v59  ;;  %1343 = vmatprep.subr.bf16.mxu1 %v1473_v41 }
 0x1e7   :  { %v502_v10 = vrot.slane %v501_v12, 1  ;;  %v663_v11 = vrot.slane %v662_v0, 2  ;;  %v824_v13 = vrot.slane %v823_v1, 4 }
 0x1e9   :  { %v503_v16 = vmax.f32 %v501_v12, %v502_v10  ;;  %v664_v22 = vmax.f32 %v662_v0, %v663_v11  ;;  %v825_v17 = vmax.f32 %v823_v1, %v824_v13  ;;  %v411_v25 = vpop.permute.xlu1 %410  ;;  %v409_v27 = vpop.permute.xlu0 %408  ;;  %v1344_v12 = vpack.c.bf16 %v918_v50, %v917_v32 }
 0x1ea   :  { %v445_v33 = vadd.f32 %v411_v25, %v356_v15  ;;  %v444_v30 = vadd.f32 %v409_v27, %v355_v24  ;;  %v520_v0 = vrot.slane %v519_v36, 1  ;;  %v682_v1 = vmax.f32 %v680_v44, %v681_v28 }
 0x1eb   :  { %v665_v35 = vrot.slane %v664_v22, 1  ;;  %v826_v23 = vrot.slane %v825_v17, 2  ;;  %v1944_v37 = vsel %vm864_vm15, %v503_v16, %v863_v57  ;;  %1345 = vmatpush3.bf16.msra.mxu1 %v1344_v12 }
 0x1ec   :  { %v505_v51 = vsel %vm450_vm6, %v445_v33, -inf  ;;  %v504_v59 = vsel %vm448_vm5, %v444_v30, -inf  ;;  %v521_v25 = vmax.f32 %v519_v36, %v520_v0  ;;  %vm924_vm6 = vcmask 195584   ;;  %v1019_v0 = vld [vmem:[#allocation5 + $0x50] sm:$0xff] }
 0x1ed   :  { %v666_v38 = vmax.f32 %v664_v22, %v665_v35  ;;  %v827_v45 = vmax.f32 %v825_v17, %v826_v23  ;;  %v506_v47 = vmax.f32 %v504_v59, %v505_v51  ;;  %v574_v9 = vpop.permute.xlu1 %573  ;;  %v572_v54 = vpop.permute.xlu0 %571  ;;  %v683_v17 = vrot.slane %v682_v1, 1  ;;  %v919_v51 = vld [vmem:[#allocation5 + $0x30] sm:$0xff] }
 0x1ee   :  { %v608_v43 = vadd.f32 %v574_v9, %v445_v33  ;;  %v607_v3 = vadd.f32 %v572_v54, %v444_v30 }
 0x1ef   :  { %v828_v4 = vrot.slane %v827_v45, 1  ;;  %v507_v62 = vrot.slane %v506_v47, 4  ;;  %v883_v6 = vsel %vm864_vm15, %v666_v38, %v882_v18  ;;  %v684_v23 = vmax.f32 %v682_v1, %v683_v17 }
 0x1f0   :  { %v668_v57 = vsel %vm613_vm7, %v608_v43, -inf  ;;  %v667_v60 = vsel %vm611_vm8, %v607_v3, -inf }
 0x1f1   :  { %v829_v21 = vmax.f32 %v827_v45, %v828_v4  ;;  %v508_v34 = vmax.f32 %v506_v47, %v507_v62  ;;  %v669_v39 = vmax.f32 %v667_v60, %v668_v57  ;;  %v737_v40 = vpop.permute.xlu1 %736  ;;  %v735_v42 = vpop.permute.xlu0 %734  ;;  %v1474_v47 = vmov 0.0   ;;  %v1975_v57 = vld [vmem:[#allocation5 + $0x78] sm:$0xff] }
 0x1f2   :  { %v771_v26 = vadd.f32 %v737_v40, %v608_v43  ;;  %v770_v46 = vadd.f32 %v735_v42, %v607_v3  ;;  %1308 = vmatprep.subr.mxu1 %v1474_v47  ;;  %1310 = vmatprep.mubr.msk.f32.mxu1 %vm1475_vm3, %v1474_v47  ;;  %v911_v4 = vlaneseq }
 0x1f3   :  { %v509_v49 = vrot.slane %v508_v34, 2  ;;  %v670_v8 = vrot.slane %v669_v39, 4  ;;  %v901_v31 = vsel %vm864_vm15, %v829_v21, %v900_v63  ;;  %1309 = vmatpush3.msra.mxu1 %v919_v51 }
 0x1f4   :  { %v831_v48 = vsel %vm776_vm9, %v771_v26, -inf  ;;  %v830_v18 = vsel %vm774_vm10, %v770_v46, -inf  ;;  %1346 = vmatprep.subr.bf16.mxu1 %v1473_v41  ;;  %v1972_v62 = vshrl.u32 %v911_v4, 7 }
 0x1f5   :  { %v510_v52 = vmax.f32 %v508_v34, %v509_v49  ;;  %v671_v53 = vmax.f32 %v669_v39, %v670_v8  ;;  %v832_v56 = vmax.f32 %v830_v18, %v831_v48  ;;  %v741_v61 = vpop.permute.xlu1 %740  ;;  %v739_v14 = vpop.permute.xlu0 %738 }
 0x1f6   :  { %v773_v2 = vadd.f32 %v741_v61, %v1870_v58  ;;  %v772_v63 = vadd.f32 %v739_v14, %v1879_v19  ;;  %v922_v28 = vsub.s32 1, %v1972_v62  ;;  %v1017_v61 = vld [vmem:[#allocation5 + $0x40] sm:$0xff]  ;;  %v1018_v14 = vld [vmem:[#allocation5 + $0x48] sm:$0xff] }
 0x1f7   :  { %v511_v5 = vrot.slane %v510_v52, 1  ;;  %v672_v7 = vrot.slane %v671_v53, 2  ;;  %v833_v10 = vrot.slane %v832_v56, 4  ;;  %v1350_v1 = vpack.c.bf16 %v1019_v0, %v1018_v14 }
 0x1f8   :  { %v840_v11 = vsel %vm776_vm9, %v773_v2, -inf  ;;  %v839_v13 = vsel %vm774_vm10, %v772_v63, -inf  ;;  %v923_v26 = vrot.slane %v1975_v57, %v922_v28 }
 0x1f9   :  { %v512_v15 = vmax.f32 %v510_v52, %v511_v5  ;;  %v673_v24 = vmax.f32 %v671_v53, %v672_v7  ;;  %v834_v16 = vmax.f32 %v832_v56, %v833_v10  ;;  %v841_v22 = vmax.f32 %v839_v13, %v840_v11  ;;  %v1016_v56 = vld [vmem:[#allocation5 + $0x38] sm:$0xff] }
 0x1fa   :  { %v1347_v12 = vpack.c.bf16 %v1017_v61, %v1016_v56  ;;  %v1022_v10 = vsub.s32 2, %v1972_v62 }
 0x1fb   :  { %v674_v27 = vrot.slane %v673_v24, 1  ;;  %v835_v58 = vrot.slane %v834_v16, 2  ;;  %v842_v29 = vrot.slane %v841_v22, 4  ;;  %v867_v19 = vsel %vm866_vm1, %v512_v15, %v1944_v37 }
 0x1fc   :  { %v869_v20 = vsel %vm868_vm2, %v521_v25, %v867_v19  ;;  %v1023_v11 = vrot.slane %v1975_v57, %v1022_v10  ;;  %v1117_v19 = vld [vmem:[#allocation5 + $0x58] sm:$0xff] }
 0x1fd   :  { %v836_v33 = vmax.f32 %v834_v16, %v835_v58  ;;  %v843_v30 = vmax.f32 %v841_v22, %v842_v29  ;;  %v675_v35 = vmax.f32 %v673_v24, %v674_v27 }
 0x1ff   :  { %v837_v59 = vrot.slane %v836_v33, 1  ;;  %v844_v38 = vrot.slane %v843_v30, 2  ;;  %v884_v45 = vsel %vm866_vm1, %v675_v35, %v883_v6  ;;  %v913_v6 = vsub.s32 0, %v1972_v62  ;;  %v1120_v35 = vld [vmem:[#allocation5 + $0x70] sm:$0xff] }
 0x200   :  { %v885_v37 = vsel %vm868_vm2, %v684_v23, %v884_v45 }
 0x201   :  { %v845_v9 = vmax.f32 %v843_v30, %v844_v38  ;;  %886 = vrot.lane.b32.xlu0 %v885_v37, %s1469_s1  ;;  %v838_v54 = vmax.f32 %v836_v33, %v837_v59  ;;  %v914_v21 = vrot.slane %v1975_v57, %v913_v6  ;;  %v1119_v33 = vld [vmem:[#allocation5 + $0x68] sm:$0xff] }
 0x202   :  { %v1356_v23 = vpack.c.bf16 %v1120_v35, %v1119_v33 }
 0x203   :  { %v846_v55 = vrot.slane %v845_v9, 1  ;;  %v902_v44 = vsel %vm866_vm1, %v838_v54, %v901_v31 }
 0x205   :  { %v847_v43 = vmax.f32 %v845_v9, %v846_v55 }
 0x207   :  { %v903_v3 = vsel %vm868_vm2, %v847_v43, %v902_v44 }
 0x208   :  { %904 = vrot.lane.b32.xlu1 %v903_v3, %s1476_s9 }
 0x273   :  { %v887_v60 = vpop.permute.xlu0 %886 }
 0x274   :  { %v907_v34 = vsel %vm448_vm5, %v869_v20, %v887_v60  ;;  %v1118_v20 = vld [vmem:[#allocation5 + $0x60] sm:$0xff] }
 0x275   :  { %v1353_v30 = vpack.c.bf16 %v1118_v20, %v1117_v19 }
 0x27a   :  { %v905_v39 = vpop.permute.xlu1 %904 }
 0x27b   :  { %v909_v40 = vsel %vm908_vm4, %v907_v34, %v905_v39 }
 0x27c   :  { %v915_v42 = vadd.f32 %v914_v21, %v909_v40 }
 0x27e   :  { %v916_v36 = vmax.f32 %v915_v42, 0.0 }
 0x280   :  { %1311 = vmatmul.mubr.msk.f32.vlgmr.msra.gmra.mrb[2].mxu1 %vm924_vm6, %v916_v36 }
 0x281   :  { %1321 = vmatprep.mubr.msk.f32.mxu1 %vm1475_vm3, %v1474_v47  ;;  %1348 = vmatpush3.bf16.msra.mxu1 %v1347_v12 }
 0x282   :  { %1349 = vmatprep.subr.bf16.mxu1 %v1473_v41 }
 0x285   :  { %1351 = vmatpush3.bf16.msra.mxu1 %v1350_v1 }
 0x286   :  { %1352 = vmatprep.subr.bf16.mxu1 %v1473_v41 }
 0x353   :  { %v994_v46 = vpop.f32.mrb[2].mxu1 }
 0x354   :  { %v995_v49 = vadd.f32 %v994_v46, %v923_v26  ;;  %v1312_v8 = vpop.f32.mrb[3].mxu1 }
 0x356   :  { %1377 = vtanh.f32 %v995_v49  ;;  %v1234_v48 = vmul.f32 -1.442695, %v995_v49 }
 0x358   :  { %1379 = vpow2.f32 %v1234_v48 }
 0x360   :  { %v1378_v31 = vpop.eup %1377 }
 0x361   :  { %1006 = vrot.lane.b32.xlu0 %v1378_v31, %s1477_s10 }
 0x362   :  { %v1380_v18 = vpop.eup %1379 }
 0x363   :  { %v1001_v32 = vadd.f32 1.0, %v1380_v18 }
 0x365   :  { %1381 = vrcp.f32 %v1001_v32 }
 0x36f   :  { %v1382_v50 = vpop.eup %1381 }
 0x3d3   :  { %v1007_v52 = vpop.permute.xlu0 %1006 }
 0x3d4   :  { %v1009_v53 = vmul.f32 %v1382_v50, %v1007_v52 }
 0x3d6   :  { %1383 = vtanh.f32 %v1009_v53 }
 0x3e0   :  { %v1384_v2 = vpop.eup %1383 }
 0x3e1   :  { %1012 = vrot.lane.b32.xlu1 %v1384_v2, %s1472_s8 }
 0x453   :  { %v1013_v63 = vpop.permute.xlu1 %1012 }
 0x454   :  { %v1015_v5 = vmul.f32 %v1382_v50, %v1013_v63 }
 0x456   :  { %1025 = vrot.lane.b32.xlu0 %v1015_v5, %s1478_s11 }
 0x4c8   :  { %v1026_v7 = vpop.permute.xlu0 %1025 }
 0x4c9   :  { %1322 = vmatmul.mubr.msk.f32.vlgmr.msra.gmra.mrb[4].mxu1 %vm60_vm0, %v1026_v7 }
 0x4ca   :  { %1332 = vmatprep.mubr.msk.f32.mxu1 %vm1475_vm3, %v1474_v47  ;;  %1354 = vmatpush3.bf16.msra.mxu1 %v1353_v30  ;;  %v1123_v47 = vsub.s32 3, %v1972_v62 }
 0x4cb   :  { %1355 = vmatprep.subr.bf16.mxu1 %v1473_v41 }
 0x4cc   :  { %v1124_v37 = vrot.slane %v1975_v57, %v1123_v47 }
 0x4ce   :  { %1357 = vmatpush3.bf16.msra.mxu1 %v1356_v23 }
 0x59c   :  { %v1095_v13 = vpop.f32.mrb[4].mxu1 }
 0x59d   :  { %v1096_v15 = vadd.f32 %v1095_v13, %v1023_v11  ;;  %v1323_v24 = vpop.f32.mrb[5].mxu1 }
 0x59f   :  { %1385 = vtanh.f32 %v1096_v15  ;;  %v1236_v22 = vmul.f32 -1.442695, %v1096_v15 }
 0x5a1   :  { %1387 = vpow2.f32 %v1236_v22 }
 0x5a9   :  { %v1386_v16 = vpop.eup %1385 }
 0x5aa   :  { %1107 = vrot.lane.b32.xlu1 %v1386_v16, %s1477_s10 }
 0x5ab   :  { %v1388_v17 = vpop.eup %1387 }
 0x5ac   :  { %v1102_v25 = vadd.f32 1.0, %v1388_v17 }
 0x5ae   :  { %1389 = vrcp.f32 %v1102_v25 }
 0x5b8   :  { %v1390_v27 = vpop.eup %1389 }
 0x61c   :  { %v1108_v58 = vpop.permute.xlu1 %1107 }
 0x61d   :  { %v1110_v29 = vmul.f32 %v1390_v27, %v1108_v58 }
 0x61f   :  { %1391 = vtanh.f32 %v1110_v29 }
 0x629   :  { %v1392_v51 = vpop.eup %1391 }
 0x62a   :  { %1113 = vrot.lane.b32.xlu0 %v1392_v51, %s1472_s8 }
 0x69c   :  { %v1114_v59 = vpop.permute.xlu0 %1113 }
 0x69d   :  { %v1116_v38 = vmul.f32 %v1390_v27, %v1114_v59 }
 0x69f   :  { %1126 = vrot.lane.b32.xlu1 %v1116_v38, %s1478_s11 }
 0x711   :  { %v1127_v45 = vpop.permute.xlu1 %1126 }
 0x712   :  { %1333 = vmatmul.mubr.msk.f32.vlgmr.msra.gmra.mrb[6].mxu1 %vm60_vm0, %v1127_v45 }
 0x7e5   :  { %v1196_v9 = vpop.f32.mrb[6].mxu1 }
 0x7e6   :  { %v1197_v54 = vadd.f32 %v1196_v9, %v1124_v37  ;;  %v1334_v41 = vpop.f32.mrb[7].mxu1 }
 0x7e8   :  { %1200 = vst [vmem:[#allocation7] sm:$0xff] %v1197_v54 }
 0x7e9   :  { %1448 = shalt.err (!%p1445_p6)
}
 0x7ea   :  { %s1449_s17 = scalar_lea.hbm %s2014_s2, 128 }
 0x7eb   :  { %p1450_p7 = scmp.ne.s32.totalorder %s2014_s2, %s1449_s17  ;;  %p1453_p8 = scmp.lt.u32.totalorder %s1449_s17, %s2014_s2 }
 0x7ed   :  { %p1455_p9 = pnand %p1453_p8, %p1450_p7 }
 0x7ef   :  { %1458 = shalt.err (!%p1455_p9)
}
 0x7f0   :  { %1210 = dma.vmem_to_hbm [thread:$0]  %s1208_s13, 128, %s2014_s2, [#allocation4]  }
 0x7f1   :  { %1463 = dma.done.wait [#allocation4], 128  }
 0x7f2   :  { %1464 = vsyncadd [#allocation4], 4294967168 }
 0x7f3   :  { %1214 = vsyncpa [#allocation3], 1 }
 0x7f4   :  { %1215 = vsyncpa [#allocation6], 1 }
 0x7f5   :  { %1216 = vsyncpa [#allocation4], 1 }

</bundles_post_ra>
